<compile_context>
chip_gen: v7x
topology: tpu7x:2x2x1
jax: 0.10.0
libtpu: 0.0.40
codegen_flags: <defaults>
</compile_context>

<pallas_src>
import math
import functools

import jax
import jax.numpy as jnp
from jax.experimental import pallas as pl
from jax.experimental.pallas import tpu as pltpu


def _mha_kernel(xq_ref, xk_ref, mask_ref, wq_ref, wk_ref, wv_ref, wo_ref, o_ref,
                *, n_head, d_qkv):
    scale = 1.0 / math.sqrt(d_qkv)

    xq = xq_ref[0]          # [tq, d_model]  bf16 (query rows of this tile)
    xk = xk_ref[0]          # [L,  d_model]  bf16 (full sequence for keys/values)
    m = mask_ref[0]         # [1,  L]        f32  (1 = attend, 0 = pad) -> masks keys

    wq = wq_ref[...]        # [d_model, n_head*d_qkv] bf16 (heads fused on columns)
    wk = wk_ref[...]
    wv = wv_ref[...]
    wo = wo_ref[...]        # [n_head*d_qkv, d_model] bf16 (heads fused on rows)

    # Fused projections: N = n_head*d_qkv (=128 for default config) fills the MXU lanes.
    q = jnp.dot(xq, wq, preferred_element_type=jnp.float32) * scale   # [tq, H*dq] f32
    k = jnp.dot(xk, wk, preferred_element_type=jnp.float32)           # [L,  H*dq] f32
    v = jnp.dot(xk, wv, preferred_element_type=jnp.float32)           # [L,  H*dq] f32

    q = q.astype(jnp.bfloat16)
    k = k.astype(jnp.bfloat16)
    v = v.astype(jnp.bfloat16)

    neg = jnp.float32(-1e9)
    ctx_heads = []
    for h in range(n_head):                       # static, small (n_head) loop
        sl = slice(h * d_qkv, (h + 1) * d_qkv)
        qh = q[:, sl]                             # [tq, d_qkv]
        kh = k[:, sl]                             # [L,  d_qkv]
        vh = v[:, sl]                             # [L,  d_qkv]

        # Contract last axis of both operands -> no explicit transpose of k.
        s = jax.lax.dot_general(qh, kh, (((1,), (1,)), ((), ())),
                                preferred_element_type=jnp.float32)   # [tq, L]
        s = jnp.where(m == 0.0, neg, s)

        # softmax over the key axis (f32 math)
        s_max = jnp.max(s, axis=-1, keepdims=True)
        p = jnp.exp(s - s_max)
        p = p * pl.reciprocal(jnp.sum(p, axis=-1, keepdims=True), approx=True)

        ctx_heads.append(
            jnp.dot(p.astype(jnp.bfloat16), vh,
                    preferred_element_type=jnp.float32))              # [tq, d_qkv]

    ctx = jnp.concatenate(ctx_heads, axis=-1).astype(jnp.bfloat16)    # [tq, H*dq]
    # Single wide output projection == sum over heads of ctx_h @ w_o[h].
    o_ref[0] = jnp.dot(ctx, wo, preferred_element_type=jnp.float32)   # [tq, d_model]


def multi_head_attention(x, mask, w_q, w_k, w_v, w_o, *, q_tile=256):
    """x: [B, L, d_model] f32, mask: [B, L] f32 (1=keep, 0=pad). Returns [B, L, d_model] f32."""
    B, L, d_model = x.shape
    n_head, _, d_qkv = w_q.shape

    # Query tile: full L if small, else the largest divisor of L that is <= q_tile
    # and a multiple of 8 (sublane constraint).
    tq = L
    if L > q_tile:
        for cand in range(min(q_tile, L), 7, -1):
            if L % cand == 0 and cand % 8 == 0:
                tq = cand
                break
    n_q = L // tq

    # bf16 matmul inputs (halves HBM/VMEM traffic, 2x MXU throughput); f32 accumulation
    # inside the kernel.
    x_bf = x.astype(jnp.bfloat16)
    wq_f = jnp.transpose(w_q, (1, 0, 2)).reshape(d_model, n_head * d_qkv).astype(jnp.bfloat16)
    wk_f = jnp.transpose(w_k, (1, 0, 2)).reshape(d_model, n_head * d_qkv).astype(jnp.bfloat16)
    wv_f = jnp.transpose(w_v, (1, 0, 2)).reshape(d_model, n_head * d_qkv).astype(jnp.bfloat16)
    wo_f = w_o.reshape(n_head * d_qkv, d_model).astype(jnp.bfloat16)
    mask3 = mask.reshape(B, 1, L).astype(jnp.float32)

    kernel = functools.partial(_mha_kernel, n_head=n_head, d_qkv=d_qkv)

    return pl.pallas_call(
        kernel,
        out_shape=jax.ShapeDtypeStruct((B, L, d_model), jnp.float32),
        grid_spec=pltpu.PrefetchScalarGridSpec(
            num_scalar_prefetch=0,
            grid=(B, n_q),
            in_specs=[
                pl.BlockSpec((1, tq, d_model), lambda b, qi: (b, qi, 0)),       # x (query tile)
                pl.BlockSpec((1, L, d_model), lambda b, qi: (b, 0, 0)),         # x (keys/values)
                pl.BlockSpec((1, 1, L), lambda b, qi: (b, 0, 0)),               # mask
                pl.BlockSpec((d_model, n_head * d_qkv), lambda b, qi: (0, 0)),  # W_q fused
                pl.BlockSpec((d_model, n_head * d_qkv), lambda b, qi: (0, 0)),  # W_k fused
                pl.BlockSpec((d_model, n_head * d_qkv), lambda b, qi: (0, 0)),  # W_v fused
                pl.BlockSpec((n_head * d_qkv, d_model), lambda b, qi: (0, 0)),  # W_o fused
            ],
            out_specs=pl.BlockSpec((1, tq, d_model), lambda b, qi: (b, qi, 0)),
        ),
        compiler_params=pltpu.CompilerParams(
            # Both axes write disjoint output tiles -> both parallel (megacore on v7x).
            dimension_semantics=("parallel", "parallel"),
            # Explicit limit, kept under the v7x 64 MiB physical VMEM budget.
            vmem_limit_bytes=48 * 1024 * 1024,
        ),
    )(x_bf, x_bf, mask3, wq_f, wk_f, wv_f, wo_f)


def _reference(x, mask, w_q, w_k, w_v, w_o):
    d_qkv = w_q.shape[-1]
    q = jnp.einsum('blm,nmh->bnlh', x, w_q)
    k = jnp.einsum('blm,nmh->bnlh', x, w_k)
    v = jnp.einsum('blm,nmh->bnlh', x, w_v)
    scores = jnp.einsum('bnqh,bnkh->bnqk', q, k) / math.sqrt(d_qkv)
    scores = jnp.where((mask == 0)[:, None, None, :], -1e9, scores)
    p = jax.nn.softmax(scores, axis=-1)
    ctx = jnp.einsum('bnqk,bnkh->bnqh', p, v)
    out = jnp.einsum('bnlh,nhm->bnlm', ctx, w_o)
    return out.sum(axis=1)


if __name__ == "__main__":
    # small, deterministic setup (module defaults: d_model=256, n_head=4, d_qkv=32)
    B, L = 2, 8
    d_model, n_head, d_qkv = 256, 4, 32

    key = jax.random.PRNGKey(0)
    kx, kq, kk, kv, ko = jax.random.split(key, 5)

    x = jax.random.normal(kx, (B, L, d_model), dtype=jnp.float32)

    # xavier-normal style init (deterministic, in-script)
    std_in = math.sqrt(2.0 / (d_model * d_qkv + n_head * d_qkv))
    std_out = math.sqrt(2.0 / (d_qkv * d_model + n_head * d_model))
    w_q = std_in * jax.random.normal(kq, (n_head, d_model, d_qkv), dtype=jnp.float32)
    w_k = std_in * jax.random.normal(kk, (n_head, d_model, d_qkv), dtype=jnp.float32)
    w_v = std_in * jax.random.normal(kv, (n_head, d_model, d_qkv), dtype=jnp.float32)
    w_o = std_out * jax.random.normal(ko, (n_head, d_qkv, d_model), dtype=jnp.float32)

    # mask: last two tokens of batch 1 are padding
    mask = jnp.ones((B, L), dtype=jnp.float32)
    mask = mask.at[1, -2:].set(0.0)

    out = multi_head_attention(x, mask, w_q, w_k, w_v, w_o)
    out = jax.block_until_ready(out)

    ref = _reference(x, mask, w_q, w_k, w_v, w_o)
    assert out.shape == (B, L, d_model)
    # tolerance accounts for bf16 matmul inputs (f32 accumulation) in the kernel
    assert jnp.allclose(out, ref, atol=1e-2, rtol=1e-2), "mismatch vs reference"

    print("KERNEL_OK")
</pallas_src>

<mosaic_0001>
module attributes {stable_mosaic.version = 11 : i64} {
  func.func @_mha_kernel(%arg0: i32, %arg1: i32, %arg2: memref<1x8x256xbf16, #tpu.memory_space<vmem>>, %arg3: memref<1x8x256xbf16, #tpu.memory_space<vmem>>, %arg4: memref<1x1x8xf32, #tpu.memory_space<vmem>>, %arg5: memref<256x128xbf16, #tpu.memory_space<vmem>>, %arg6: memref<256x128xbf16, #tpu.memory_space<vmem>>, %arg7: memref<256x128xbf16, #tpu.memory_space<vmem>>, %arg8: memref<128x256xbf16, #tpu.memory_space<vmem>>, %arg9: memref<1x8x256xf32, #tpu.memory_space<vmem>>) attributes {dimension_semantics = [#tpu.dimension_semantics<parallel>, #tpu.dimension_semantics<parallel>], iteration_bounds = array<i64: 2, 1>, scalar_prefetch = 0 : i64, scratch_operands = 0 : i64, tpu.core_type = #tpu.core_type<tc>, window_params = [{transform_indices = @transform_0, window_bounds = array<i64: 1, 8, 256>}, {transform_indices = @transform_1, window_bounds = array<i64: 1, 8, 256>}, {transform_indices = @transform_2, window_bounds = array<i64: 1, 1, 8>}, {pipeline_mode = #tpu.pipeline_mode<synchronous>, transform_indices = @transform_3, window_bounds = array<i64: 256, 128>}, {pipeline_mode = #tpu.pipeline_mode<synchronous>, transform_indices = @transform_4, window_bounds = array<i64: 256, 128>}, {pipeline_mode = #tpu.pipeline_mode<synchronous>, transform_indices = @transform_5, window_bounds = array<i64: 256, 128>}, {pipeline_mode = #tpu.pipeline_mode<synchronous>, transform_indices = @transform_6, window_bounds = array<i64: 128, 256>}, {transform_indices = @transform_7, window_bounds = array<i64: 1, 8, 256>}]} {
    %c0 = arith.constant 0 : index
    %c0_0 = arith.constant 0 : index
    %c0_1 = arith.constant 0 : index
    %0 = vector.load %arg2[%c0, %c0_0, %c0_1] : memref<1x8x256xbf16, #tpu.memory_space<vmem>>, vector<1x8x256xbf16>
    %1 = vector.shape_cast %0 : vector<1x8x256xbf16> to vector<8x256xbf16>
    %c0_2 = arith.constant 0 : index
    %c0_3 = arith.constant 0 : index
    %c0_4 = arith.constant 0 : index
    %2 = vector.load %arg3[%c0_2, %c0_3, %c0_4] : memref<1x8x256xbf16, #tpu.memory_space<vmem>>, vector<1x8x256xbf16>
    %3 = vector.shape_cast %2 : vector<1x8x256xbf16> to vector<8x256xbf16>
    %c0_5 = arith.constant 0 : index
    %c0_6 = arith.constant 0 : index
    %c0_7 = arith.constant 0 : index
    %4 = vector.load %arg4[%c0_5, %c0_6, %c0_7] : memref<1x1x8xf32, #tpu.memory_space<vmem>>, vector<1x1x8xf32>
    %5 = vector.shape_cast %4 : vector<1x1x8xf32> to vector<1x8xf32>
    %c0_8 = arith.constant 0 : index
    %c0_9 = arith.constant 0 : index
    %6 = vector.load %arg5[%c0_8, %c0_9] : memref<256x128xbf16, #tpu.memory_space<vmem>>, vector<256x128xbf16>
    %c0_10 = arith.constant 0 : index
    %c0_11 = arith.constant 0 : index
    %7 = vector.load %arg6[%c0_10, %c0_11] : memref<256x128xbf16, #tpu.memory_space<vmem>>, vector<256x128xbf16>
    %c0_12 = arith.constant 0 : index
    %c0_13 = arith.constant 0 : index
    %8 = vector.load %arg7[%c0_12, %c0_13] : memref<256x128xbf16, #tpu.memory_space<vmem>>, vector<256x128xbf16>
    %c0_14 = arith.constant 0 : index
    %c0_15 = arith.constant 0 : index
    %9 = vector.load %arg8[%c0_14, %c0_15] : memref<128x256xbf16, #tpu.memory_space<vmem>>, vector<128x256xbf16>
    %cst = arith.constant dense<0.000000e+00> : vector<8x128xf32>
    %10 = tpu.matmul %1, %6, %cst {dimension_numbers = #tpu.dot_dimension_numbers<[1], [0], [0], [1], [0, 0, 1, 1], [], []>} : vector<8x256xbf16>, vector<256x128xbf16>, vector<8x128xf32> -> vector<8x128xf32>
    %cst_16 = arith.constant 0.176776692 : f32
    %11 = vector.broadcast %cst_16 : f32 to vector<8x128xf32>
    %12 = arith.mulf %10, %11 : vector<8x128xf32>
    %cst_17 = arith.constant dense<0.000000e+00> : vector<8x128xf32>
    %13 = tpu.matmul %3, %7, %cst_17 {dimension_numbers = #tpu.dot_dimension_numbers<[1], [0], [0], [1], [0, 0, 1, 1], [], []>} : vector<8x256xbf16>, vector<256x128xbf16>, vector<8x128xf32> -> vector<8x128xf32>
    %cst_18 = arith.constant dense<0.000000e+00> : vector<8x128xf32>
    %14 = tpu.matmul %3, %8, %cst_18 {dimension_numbers = #tpu.dot_dimension_numbers<[1], [0], [0], [1], [0, 0, 1, 1], [], []>} : vector<8x256xbf16>, vector<256x128xbf16>, vector<8x128xf32> -> vector<8x128xf32>
    %15 = arith.truncf %12 : vector<8x128xf32> to vector<8x128xbf16>
    %16 = arith.truncf %13 : vector<8x128xf32> to vector<8x128xbf16>
    %17 = arith.truncf %14 : vector<8x128xf32> to vector<8x128xbf16>
    %18 = vector.extract_strided_slice %15 {offsets = [0, 0], sizes = [8, 32], strides = [1, 1]} : vector<8x128xbf16> to vector<8x32xbf16>
    %19 = vector.extract_strided_slice %16 {offsets = [0, 0], sizes = [8, 32], strides = [1, 1]} : vector<8x128xbf16> to vector<8x32xbf16>
    %20 = vector.extract_strided_slice %17 {offsets = [0, 0], sizes = [8, 32], strides = [1, 1]} : vector<8x128xbf16> to vector<8x32xbf16>
    %cst_19 = arith.constant dense<0.000000e+00> : vector<8x8xf32>
    %21 = tpu.matmul %18, %19, %cst_19 {dimension_numbers = #tpu.dot_dimension_numbers<[1], [1], [0], [0], [0, 0, 1, 0], [], []>} : vector<8x32xbf16>, vector<8x32xbf16>, vector<8x8xf32> -> vector<8x8xf32>
    %cst_20 = arith.constant 0.000000e+00 : f32
    %22 = vector.broadcast %cst_20 : f32 to vector<1x8xf32>
    %23 = arith.cmpf oeq, %5, %22 : vector<1x8xf32>
    %cst_21 = arith.constant -1.000000e+09 : f32
    %24 = vector.shape_cast %23 : vector<1x8xi1> to vector<1x8xi1>
    %25 = vector.broadcast %24 : vector<1x8xi1> to vector<8x8xi1>
    %26 = vector.broadcast %cst_21 : f32 to vector<8x8xf32>
    %27 = arith.select %25, %26, %21 : vector<8x8xi1>, vector<8x8xf32>
    %cst_22 = arith.constant dense<0xFF800000> : vector<8xf32>
    %28 = vector.multi_reduction <maximumf>, %27, %cst_22 [1] : vector<8x8xf32> to vector<8xf32>
    %29 = vector.shape_cast %28 : vector<8xf32> to vector<8x1xf32>
    %30 = vector.broadcast %29 : vector<8x1xf32> to vector<8x8xf32>
    %31 = arith.subf %27, %30 : vector<8x8xf32>
    %32 = math.exp %31 : vector<8x8xf32>
    %cst_23 = arith.constant dense<0.000000e+00> : vector<8xf32>
    %33 = vector.multi_reduction <add>, %32, %cst_23 [1] : vector<8x8xf32> to vector<8xf32>
    %34 = vector.shape_cast %33 : vector<8xf32> to vector<8x1xf32>
    %35 = tpu.reciprocal %34 {approx = true} : vector<8x1xf32> -> vector<8x1xf32>
    %36 = vector.broadcast %35 : vector<8x1xf32> to vector<8x8xf32>
    %37 = arith.mulf %32, %36 : vector<8x8xf32>
    %38 = arith.truncf %37 : vector<8x8xf32> to vector<8x8xbf16>
    %cst_24 = arith.constant dense<0.000000e+00> : vector<8x32xf32>
    %39 = tpu.matmul %38, %20, %cst_24 {dimension_numbers = #tpu.dot_dimension_numbers<[1], [0], [0], [1], [0, 0, 1, 1], [], []>} : vector<8x8xbf16>, vector<8x32xbf16>, vector<8x32xf32> -> vector<8x32xf32>
    %40 = vector.extract_strided_slice %15 {offsets = [0, 32], sizes = [8, 32], strides = [1, 1]} : vector<8x128xbf16> to vector<8x32xbf16>
    %41 = vector.extract_strided_slice %16 {offsets = [0, 32], sizes = [8, 32], strides = [1, 1]} : vector<8x128xbf16> to vector<8x32xbf16>
    %42 = vector.extract_strided_slice %17 {offsets = [0, 32], sizes = [8, 32], strides = [1, 1]} : vector<8x128xbf16> to vector<8x32xbf16>
    %cst_25 = arith.constant dense<0.000000e+00> : vector<8x8xf32>
    %43 = tpu.matmul %40, %41, %cst_25 {dimension_numbers = #tpu.dot_dimension_numbers<[1], [1], [0], [0], [0, 0, 1, 0], [], []>} : vector<8x32xbf16>, vector<8x32xbf16>, vector<8x8xf32> -> vector<8x8xf32>
    %cst_26 = arith.constant 0.000000e+00 : f32
    %44 = vector.broadcast %cst_26 : f32 to vector<1x8xf32>
    %45 = arith.cmpf oeq, %5, %44 : vector<1x8xf32>
    %cst_27 = arith.constant -1.000000e+09 : f32
    %46 = vector.shape_cast %45 : vector<1x8xi1> to vector<1x8xi1>
    %47 = vector.broadcast %46 : vector<1x8xi1> to vector<8x8xi1>
    %48 = vector.broadcast %cst_27 : f32 to vector<8x8xf32>
    %49 = arith.select %47, %48, %43 : vector<8x8xi1>, vector<8x8xf32>
    %cst_28 = arith.constant dense<0xFF800000> : vector<8xf32>
    %50 = vector.multi_reduction <maximumf>, %49, %cst_28 [1] : vector<8x8xf32> to vector<8xf32>
    %51 = vector.shape_cast %50 : vector<8xf32> to vector<8x1xf32>
    %52 = vector.broadcast %51 : vector<8x1xf32> to vector<8x8xf32>
    %53 = arith.subf %49, %52 : vector<8x8xf32>
    %54 = math.exp %53 : vector<8x8xf32>
    %cst_29 = arith.constant dense<0.000000e+00> : vector<8xf32>
    %55 = vector.multi_reduction <add>, %54, %cst_29 [1] : vector<8x8xf32> to vector<8xf32>
    %56 = vector.shape_cast %55 : vector<8xf32> to vector<8x1xf32>
    %57 = tpu.reciprocal %56 {approx = true} : vector<8x1xf32> -> vector<8x1xf32>
    %58 = vector.broadcast %57 : vector<8x1xf32> to vector<8x8xf32>
    %59 = arith.mulf %54, %58 : vector<8x8xf32>
    %60 = arith.truncf %59 : vector<8x8xf32> to vector<8x8xbf16>
    %cst_30 = arith.constant dense<0.000000e+00> : vector<8x32xf32>
    %61 = tpu.matmul %60, %42, %cst_30 {dimension_numbers = #tpu.dot_dimension_numbers<[1], [0], [0], [1], [0, 0, 1, 1], [], []>} : vector<8x8xbf16>, vector<8x32xbf16>, vector<8x32xf32> -> vector<8x32xf32>
    %62 = vector.extract_strided_slice %15 {offsets = [0, 64], sizes = [8, 32], strides = [1, 1]} : vector<8x128xbf16> to vector<8x32xbf16>
    %63 = vector.extract_strided_slice %16 {offsets = [0, 64], sizes = [8, 32], strides = [1, 1]} : vector<8x128xbf16> to vector<8x32xbf16>
    %64 = vector.extract_strided_slice %17 {offsets = [0, 64], sizes = [8, 32], strides = [1, 1]} : vector<8x128xbf16> to vector<8x32xbf16>
    %cst_31 = arith.constant dense<0.000000e+00> : vector<8x8xf32>
    %65 = tpu.matmul %62, %63, %cst_31 {dimension_numbers = #tpu.dot_dimension_numbers<[1], [1], [0], [0], [0, 0, 1, 0], [], []>} : vector<8x32xbf16>, vector<8x32xbf16>, vector<8x8xf32> -> vector<8x8xf32>
    %cst_32 = arith.constant 0.000000e+00 : f32
    %66 = vector.broadcast %cst_32 : f32 to vector<1x8xf32>
    %67 = arith.cmpf oeq, %5, %66 : vector<1x8xf32>
    %cst_33 = arith.constant -1.000000e+09 : f32
    %68 = vector.shape_cast %67 : vector<1x8xi1> to vector<1x8xi1>
    %69 = vector.broadcast %68 : vector<1x8xi1> to vector<8x8xi1>
    %70 = vector.broadcast %cst_33 : f32 to vector<8x8xf32>
    %71 = arith.select %69, %70, %65 : vector<8x8xi1>, vector<8x8xf32>
    %cst_34 = arith.constant dense<0xFF800000> : vector<8xf32>
    %72 = vector.multi_reduction <maximumf>, %71, %cst_34 [1] : vector<8x8xf32> to vector<8xf32>
    %73 = vector.shape_cast %72 : vector<8xf32> to vector<8x1xf32>
    %74 = vector.broadcast %73 : vector<8x1xf32> to vector<8x8xf32>
    %75 = arith.subf %71, %74 : vector<8x8xf32>
    %76 = math.exp %75 : vector<8x8xf32>
    %cst_35 = arith.constant dense<0.000000e+00> : vector<8xf32>
    %77 = vector.multi_reduction <add>, %76, %cst_35 [1] : vector<8x8xf32> to vector<8xf32>
    %78 = vector.shape_cast %77 : vector<8xf32> to vector<8x1xf32>
    %79 = tpu.reciprocal %78 {approx = true} : vector<8x1xf32> -> vector<8x1xf32>
    %80 = vector.broadcast %79 : vector<8x1xf32> to vector<8x8xf32>
    %81 = arith.mulf %76, %80 : vector<8x8xf32>
    %82 = arith.truncf %81 : vector<8x8xf32> to vector<8x8xbf16>
    %cst_36 = arith.constant dense<0.000000e+00> : vector<8x32xf32>
    %83 = tpu.matmul %82, %64, %cst_36 {dimension_numbers = #tpu.dot_dimension_numbers<[1], [0], [0], [1], [0, 0, 1, 1], [], []>} : vector<8x8xbf16>, vector<8x32xbf16>, vector<8x32xf32> -> vector<8x32xf32>
    %84 = vector.extract_strided_slice %15 {offsets = [0, 96], sizes = [8, 32], strides = [1, 1]} : vector<8x128xbf16> to vector<8x32xbf16>
    %85 = vector.extract_strided_slice %16 {offsets = [0, 96], sizes = [8, 32], strides = [1, 1]} : vector<8x128xbf16> to vector<8x32xbf16>
    %86 = vector.extract_strided_slice %17 {offsets = [0, 96], sizes = [8, 32], strides = [1, 1]} : vector<8x128xbf16> to vector<8x32xbf16>
    %cst_37 = arith.constant dense<0.000000e+00> : vector<8x8xf32>
    %87 = tpu.matmul %84, %85, %cst_37 {dimension_numbers = #tpu.dot_dimension_numbers<[1], [1], [0], [0], [0, 0, 1, 0], [], []>} : vector<8x32xbf16>, vector<8x32xbf16>, vector<8x8xf32> -> vector<8x8xf32>
    %cst_38 = arith.constant 0.000000e+00 : f32
    %88 = vector.broadcast %cst_38 : f32 to vector<1x8xf32>
    %89 = arith.cmpf oeq, %5, %88 : vector<1x8xf32>
    %cst_39 = arith.constant -1.000000e+09 : f32
    %90 = vector.shape_cast %89 : vector<1x8xi1> to vector<1x8xi1>
    %91 = vector.broadcast %90 : vector<1x8xi1> to vector<8x8xi1>
    %92 = vector.broadcast %cst_39 : f32 to vector<8x8xf32>
    %93 = arith.select %91, %92, %87 : vector<8x8xi1>, vector<8x8xf32>
    %cst_40 = arith.constant dense<0xFF800000> : vector<8xf32>
    %94 = vector.multi_reduction <maximumf>, %93, %cst_40 [1] : vector<8x8xf32> to vector<8xf32>
    %95 = vector.shape_cast %94 : vector<8xf32> to vector<8x1xf32>
    %96 = vector.broadcast %95 : vector<8x1xf32> to vector<8x8xf32>
    %97 = arith.subf %93, %96 : vector<8x8xf32>
    %98 = math.exp %97 : vector<8x8xf32>
    %cst_41 = arith.constant dense<0.000000e+00> : vector<8xf32>
    %99 = vector.multi_reduction <add>, %98, %cst_41 [1] : vector<8x8xf32> to vector<8xf32>
    %100 = vector.shape_cast %99 : vector<8xf32> to vector<8x1xf32>
    %101 = tpu.reciprocal %100 {approx = true} : vector<8x1xf32> -> vector<8x1xf32>
    %102 = vector.broadcast %101 : vector<8x1xf32> to vector<8x8xf32>
    %103 = arith.mulf %98, %102 : vector<8x8xf32>
    %104 = arith.truncf %103 : vector<8x8xf32> to vector<8x8xbf16>
    %cst_42 = arith.constant dense<0.000000e+00> : vector<8x32xf32>
    %105 = tpu.matmul %104, %86, %cst_42 {dimension_numbers = #tpu.dot_dimension_numbers<[1], [0], [0], [1], [0, 0, 1, 1], [], []>} : vector<8x8xbf16>, vector<8x32xbf16>, vector<8x32xf32> -> vector<8x32xf32>
    %106 = tpu.concatenate %39, %61, %83, %105 in 1 : vector<8x32xf32>, vector<8x32xf32>, vector<8x32xf32>, vector<8x32xf32> -> vector<8x128xf32>
    %107 = arith.truncf %106 : vector<8x128xf32> to vector<8x128xbf16>
    %cst_43 = arith.constant dense<0.000000e+00> : vector<8x256xf32>
    %108 = tpu.matmul %107, %9, %cst_43 {dimension_numbers = #tpu.dot_dimension_numbers<[1], [0], [0], [1], [0, 0, 1, 1], [], []>} : vector<8x128xbf16>, vector<128x256xbf16>, vector<8x256xf32> -> vector<8x256xf32>
    %c0_44 = arith.constant 0 : index
    %c0_45 = arith.constant 0 : index
    %c0_46 = arith.constant 0 : index
    %109 = vector.load %arg9[%c0_44, %c0_45, %c0_46] : memref<1x8x256xf32, #tpu.memory_space<vmem>>, vector<1x8x256xf32>
    %110 = vector.shape_cast %109 : vector<1x8x256xf32> to vector<8x256xf32>
    %111 = vector.shape_cast %108 : vector<8x256xf32> to vector<1x8x256xf32>
    tpu.vector_store %arg9[%c0_44, %c0_45, %c0_46], %111 {strides = array<i32>} : memref<1x8x256xf32, #tpu.memory_space<vmem>>, vector<1x8x256xf32>,
    return
  }
  func.func @transform_0(%arg0: i32, %arg1: i32) -> (i32, i32, i32) {
    %c0_i32 = arith.constant 0 : i32
    %c0_i32_0 = arith.constant 0 : i32
    return %arg0, %arg1, %c0_i32 : i32, i32, i32
  }
  func.func @transform_1(%arg0: i32, %arg1: i32) -> (i32, i32, i32) {
    %c0_i32 = arith.constant 0 : i32
    %c0_i32_0 = arith.constant 0 : i32
    %c0_i32_1 = arith.constant 0 : i32
    return %arg0, %c0_i32, %c0_i32_0 : i32, i32, i32
  }
  func.func @transform_2(%arg0: i32, %arg1: i32) -> (i32, i32, i32) {
    %c0_i32 = arith.constant 0 : i32
    %c0_i32_0 = arith.constant 0 : i32
    %c0_i32_1 = arith.constant 0 : i32
    return %arg0, %c0_i32, %c0_i32_0 : i32, i32, i32
  }
  func.func @transform_3(%arg0: i32, %arg1: i32) -> (i32, i32) {
    %c0_i32 = arith.constant 0 : i32
    %c0_i32_0 = arith.constant 0 : i32
    %c0_i32_1 = arith.constant 0 : i32
    return %c0_i32, %c0_i32_0 : i32, i32
  }
  func.func @transform_4(%arg0: i32, %arg1: i32) -> (i32, i32) {
    %c0_i32 = arith.constant 0 : i32
    %c0_i32_0 = arith.constant 0 : i32
    %c0_i32_1 = arith.constant 0 : i32
    return %c0_i32, %c0_i32_0 : i32, i32
  }
  func.func @transform_5(%arg0: i32, %arg1: i32) -> (i32, i32) {
    %c0_i32 = arith.constant 0 : i32
    %c0_i32_0 = arith.constant 0 : i32
    %c0_i32_1 = arith.constant 0 : i32
    return %c0_i32, %c0_i32_0 : i32, i32
  }
  func.func @transform_6(%arg0: i32, %arg1: i32) -> (i32, i32) {
    %c0_i32 = arith.constant 0 : i32
    %c0_i32_0 = arith.constant 0 : i32
    %c0_i32_1 = arith.constant 0 : i32
    return %c0_i32, %c0_i32_0 : i32, i32
  }
  func.func @transform_7(%arg0: i32, %arg1: i32) -> (i32, i32, i32) {
    %c0_i32 = arith.constant 0 : i32
    %c0_i32_0 = arith.constant 0 : i32
    return %arg0, %arg1, %c0_i32 : i32, i32, i32
  }
}

</mosaic_0001>

<bundles_post_ra>
// kernel: tpu_custom_call.1
= control target key start
LH: loop header
LB: loop body
LE: loop exit
PB: predicated region body
PF: predicated region fallthrough
CT: control target
= control target key end

     0   :  { %s2946_s0 = inlined_call_operand.hbm [shape: bf16[2,8,256], index: 0, kind: input, shape index: {}]   ;;  %s2947_s1 = inlined_call_operand.hbm [shape: bf16[2,8,256], index: 1, kind: input, shape index: {}]   ;;  %s2948_s2 = inlined_call_operand.vmem [shape: f32[2,1,8], index: 2, kind: input, shape index: {}]   ;;  %s2949_s3 = inlined_call_operand.hbm [shape: bf16[256,128], index: 3, kind: input, shape index: {}]   ;;  %s2950_s4 = inlined_call_operand.hbm [shape: bf16[256,128], index: 4, kind: input, shape index: {}]   ;;  %s2951_s5 = inlined_call_operand.hbm [shape: bf16[256,128], index: 5, kind: input, shape index: {}]   ;;  %s2952_s6 = inlined_call_operand.hbm [shape: bf16[128,256], index: 6, kind: input, shape index: {}]   ;;  %s2953_s7 = inlined_call_operand.hbm [shape: f32[2,8,256], index: 7, kind: output, shape index: {}]  }
   0x1   :  { %2960 = sst [smem:[#allocation21_spill]] %s2949_s3 }
   0x2   :  { %2961 = sst [smem:[#allocation22_spill]] %s2950_s4 }
   0x3   :  { %2962 = sst [smem:[#allocation23_spill]] %s2951_s5 }
   0x4   :  { %2963 = sst [smem:[#allocation24_spill]] %s2952_s6 }
   0x5   :  { %2964 = sst [smem:[#allocation25_spill]] %s2953_s7 }
   0x6   :  { %12 = vsyncpa [#allocation3], 0 }
   0x7   :  { %14 = vsyncpa [#allocation3 + $0x1], 0 }
   0x8   :  { %15 = vsyncpa [#allocation6], 0 }
   0x9   :  { %17 = vsyncpa [#allocation6 + $0x1], 0 }
   0xa   :  { %18 = vsyncpa [#allocation9], 0 }
   0xb   :  { %19 = vsyncpa [#allocation12], 0 }
   0xc   :  { %20 = vsyncpa [#allocation4], 0 }
   0xd   :  { %22 = vsyncpa [#allocation4 + $0x1], 0  ;;  %s2503_s24 = smov 0   ;;  %s2505_s25 = smov 0  }
   0xe   :  { %s2507_s26 = smov 0   ;;  %s2509_s27 = smov 0  }
   0xf   :  { %s2511_s28 = smov 0   ;;  %s2513_s29 = smov 0  }
  0x10 LB: > { %s2534_s30 = sadd.s32 4294967295, %s2444_s29   ;;  %p1730_p0 = scmp.ge.s32.totalorder %s2444_s29, 1  ;;  %s2444_s29 = sphi %s2513_s29, %s28_s29   ;;  %s2440_s28 = sphi %s2511_s28, %s2996_s28   ;;  %s2436_s27 = sphi %s2509_s27, %s2995_s27   ;;  %s2432_s26 = sphi %s2507_s26, %s2994_s26   ;;  %s2428_s25 = sphi %s2505_s25, %s2993_s25   ;;  %s2424_s24 = sphi %s2503_s24, %s2992_s24  }
  0x11   : > { %p2955_p1 = scmp.eq.s32.totalorder %s2534_s30, 0  ;;  %p237_p2 = scmp.lt.s32.totalorder %s2444_s29, 3 }
  0x12   : > { %s2446_s9 = smov [#allocation7]   ;;  %s2447_s12 = smov [#allocation8]  }
  0x13   : > { %p2539_p3 = pnand %p1730_p0, %p237_p2  ;;  %s249_s10 = sshll.u32 %s2446_s9, 4  ;;  %s2543_s10 = int_to_ptr.vmem [resolvable:$true] %s249_s10 }
  0x14   : > { %s262_s13 = sshll.u32 %s2447_s12, 4  ;;  %s2448_s14 = smov [#allocation10]   ;;  %s2554_s13 = int_to_ptr.vmem [resolvable:$true] %s262_s13 }
  0x15   : > { %s2965_s8 = scalar_select %p2539_p3, 1, 0 }
  0x16   : > { %p1986_p4 = pneg %p2539_p3  ;;  %s2556_s15 = sshll.u32 %s2448_s14, 4  ;;  %s276_s15 = int_to_ptr.vmem [resolvable:$true] %s2556_s15 }
  0x17   : > { %s2967_s3 = sld [smem:[#allocation21_spill]] }
  0x18   : > { %p2550_p6 = pnand %p1986_p4, %p2955_p1 }
  0x1a   : > { %p2566_p8 = pneg %p2550_p6 }
  0x1d   : > { %s2174_s18 = scalar_lea.hbm %s2967_s3, 2048 }
  0x1e   : > { %p2175_p7 = scmp.ne.s32.totalorder %s2967_s3, %s2174_s18  ;;  %p2181_p11 = scmp.lt.u32.totalorder %s2174_s18, %s2967_s3 }
  0x20   : > { %p2177_p9 = pnand %p2566_p8, %p2175_p7 }
  0x22   : > { %p2178_p10 = pneg %p2177_p9 }
  0x24   : > { %p2183_p12 = pnand %p2181_p11, %p2178_p10 }
  0x26   : > { %2186 = shalt.err (!%p2183_p12)
}
  0x27   : > { %s2187_s9 = scalar_lea.vmem %s2543_s10, 2048  ;;  %p2195_p4 = scmp.lt.s32.totalorder %s2543_s10, %s2543_s10 }
  0x28   : > { %p2188_p13 = scmp.ne.s32.totalorder %s2543_s10, %s2187_s9  ;;  %p2196_p5 = scmp.lt.s32.totalorder %s2187_s9, %s2187_s9 }
  0x2a   : > { %p2190_p0 = pnand %p2188_p13, %p2566_p8  ;;  %p2197_p7 = por %p2196_p5, %p2195_p4 }
  0x2c   : > { %p2191_p2 = pneg %p2190_p0 }
  0x2e   : > { %p2198_p9 = pnand %p2197_p7, %p2191_p2 }
  0x30   : > { %2201 = shalt.err (!%p2198_p9)
}
  0x31   : > { %s2449_s12 = smov 64   ;;  %s2450_s14 = smov 4  }
  0x32   : > { %1989 = dma.hbm_to_vmem [thread:$0]  (!%p2550_p6), %s2967_s3, 2048, %s2543_s10, [#allocation6], %s2449_s12, %s2449_s12, %s2450_s14  }
  0x33   : > { %s2969_s4 = sld [smem:[#allocation22_spill]] }
  0x39   : > { %s2202_s20 = scalar_lea.hbm %s2969_s4, 2048 }
  0x3a   : > { %p2203_p5 = scmp.ne.s32.totalorder %s2969_s4, %s2202_s20  ;;  %p2209_p12 = scmp.lt.u32.totalorder %s2202_s20, %s2969_s4 }
  0x3c   : > { %p2205_p10 = pnand %p2203_p5, %p2566_p8 }
  0x3e   : > { %p2206_p11 = pneg %p2205_p10 }
  0x40   : > { %p2211_p13 = pnand %p2209_p12, %p2206_p11 }
  0x42   : > { %2214 = shalt.err (!%p2211_p13)
}
  0x43   : > { %s2215_s10 = scalar_lea.vmem %s2554_s13, 2048  ;;  %p2223_p7 = scmp.lt.s32.totalorder %s2554_s13, %s2554_s13 }
  0x44   : > { %p2216_p0 = scmp.ne.s32.totalorder %s2554_s13, %s2215_s10  ;;  %p2224_p9 = scmp.lt.s32.totalorder %s2215_s10, %s2215_s10 }
  0x46   : > { %p2218_p2 = pnand %p2216_p0, %p2566_p8  ;;  %p2225_p5 = por %p2224_p9, %p2223_p7 }
  0x48   : > { %p2219_p4 = pneg %p2218_p2 }
  0x4a   : > { %p2226_p10 = pnand %p2225_p5, %p2219_p4 }
  0x4c   : > { %2229 = shalt.err (!%p2226_p10)
}
  0x4d   : > { %1992 = dma.hbm_to_vmem [thread:$0]  (!%p2550_p6), %s2969_s4, 2048, %s2554_s13, [#allocation9], %s2449_s12, %s2449_s12, %s2450_s14  }
  0x4e   : > { %s2970_s5 = sld [smem:[#allocation23_spill]] }
  0x54   : > { %s2230_s19 = scalar_lea.hbm %s2970_s5, 2048 }
  0x55   : > { %p2231_p11 = scmp.ne.s32.totalorder %s2970_s5, %s2230_s19  ;;  %p2237_p0 = scmp.lt.u32.totalorder %s2230_s19, %s2970_s5 }
  0x57   : > { %p2233_p12 = pnand %p2231_p11, %p2566_p8 }
  0x59   : > { %p2234_p13 = pneg %p2233_p12 }
  0x5b   : > { %p2239_p2 = pnand %p2237_p0, %p2234_p13 }
  0x5d   : > { %2242 = shalt.err (!%p2239_p2)
}
  0x5e   : > { %s2243_s10 = scalar_lea.vmem %s276_s15, 2048  ;;  %p2251_p5 = scmp.lt.s32.totalorder %s276_s15, %s276_s15 }
  0x5f   : > { %p2244_p4 = scmp.ne.s32.totalorder %s276_s15, %s2243_s10  ;;  %p2252_p10 = scmp.lt.s32.totalorder %s2243_s10, %s2243_s10 }
  0x61   : > { %p2246_p7 = pnand %p2244_p4, %p2566_p8  ;;  %p2253_p1 = por %p2252_p10, %p2251_p5 }
  0x63   : > { %p2247_p9 = pneg %p2246_p7 }
  0x65   : > { %p2254_p3 = pnand %p2253_p1, %p2247_p9 }
  0x67   : > { %2257 = shalt.err (!%p2254_p3)
}
  0x68   : > { %1995 = dma.hbm_to_vmem [thread:$0]  (!%p2550_p6), %s2970_s5, 2048, %s276_s15, [#allocation9], %s2449_s12, %s2449_s12, %s2450_s14  }
  0x69   : > { %s2451_s16 = smov [#allocation11]   ;;  %s2971_s6 = sld [smem:[#allocation24_spill]] }
  0x6a   : > { %s288_s17 = sshll.u32 %s2451_s16, 4  ;;  %s289_s17 = int_to_ptr.vmem [resolvable:$true] %s288_s17 }
  0x6f   : > { %s2258_s20 = scalar_lea.hbm %s2971_s6, 2048 }
  0x70   : > { %p2259_p1 = scmp.ne.s32.totalorder %s2971_s6, %s2258_s20  ;;  %p2265_p12 = scmp.lt.u32.totalorder %s2258_s20, %s2971_s6 }
  0x72   : > { %p2261_p3 = pnand %p2259_p1, %p2566_p8 }
  0x74   : > { %p2262_p11 = pneg %p2261_p3 }
  0x76   : > { %p2267_p13 = pnand %p2265_p12, %p2262_p11 }
  0x78   : > { %2270 = shalt.err (!%p2267_p13)
}
  0x79   : > { %s2271_s15 = scalar_lea.vmem %s289_s17, 2048  ;;  %p2279_p7 = scmp.lt.s32.totalorder %s289_s17, %s289_s17 }
  0x7a   : > { %p2272_p0 = scmp.ne.s32.totalorder %s289_s17, %s2271_s15  ;;  %p2280_p9 = scmp.lt.s32.totalorder %s2271_s15, %s2271_s15 }
  0x7c   : > { %p2274_p2 = pnand %p2272_p0, %p2566_p8  ;;  %p2281_p5 = por %p2280_p9, %p2279_p7 }
  0x7e   : > { %p2275_p4 = pneg %p2274_p2 }
  0x80   : > { %p2282_p10 = pnand %p2281_p5, %p2275_p4 }
  0x82   : > { %2285 = shalt.err (!%p2282_p10)
}
  0x83   : > { %s2452_s12 = smov 128   ;;  %s2453_s21 = smov 8  }
  0x84   : > { %1998 = dma.hbm_to_vmem [thread:$0]  (!%p2550_p6), %s2971_s6, 2048, %s289_s17, [#allocation12], %s2452_s12, %s2452_s12, %s2453_s21  }
  0x85   : > { %s1729_s7 = sadd.s32 4294967294, %s2444_s29   ;;  %s40_s16 = sadd.s32 1, %s2440_s28 }
  0x86   : > { %p42_p8 = scmp.ge.s32.totalorder %s40_s16, 2  ;;  %s49_s18 = sadd.s32 1, %s2432_s26 }
  0x87   : > { %p56_p1 = scmp.ne.s32.totalorder %s2432_s26, %s2428_s25  ;;  %p57_p3 = scmp.eq.s32.totalorder %s2444_s29, 0 }
  0x88   : > { %s2998_s16 = smov (%p42_p8, %s40_s16), 0  ;;  %p62_p12 = scmp.ne.s32.totalorder %s2428_s25, %s2424_s24 }
  0x89   : > { %2972 = sst [smem:[#allocation20_spill]] %s2998_s16  ;;  %p2664_p11 = por %p57_p3, %p56_p1 }
  0x8a   : > { %s44_s11 = ssub.s32 %s2440_s28, %s2998_s16  ;;  %p224_p6 = scmp.eq.s32.totalorder %s2534_s30, 1 }
  0x8b   : > { %p47_p13 = scmp.eq.s32.totalorder %s44_s11, 0  ;;  %p2974_p0 = scmp.eq.s32.totalorder %s2534_s30, 0 }
  0x8c   : > { %p2679_p4 = por %p224_p6, %p56_p1  ;;  %p230_p7 = scmp.eq.s32.totalorder %s1729_s7, 1 }
  0x8d   : > { %p2675_p2 = por %p2974_p0, %p62_p12  ;;  %p2014_p5 = scmp.lt.s32.totalorder %s2444_s29, 2 }
  0x8e   : > { %s2976_s20 = scalar_select %p2679_p4, 1, 0 }
  0x8f   : > { %s2975_s17 = scalar_select %p2675_p2, 1, 0 }
  0x90   : > { %s2684_s22 = scalar_select %p47_p13, %s2432_s26, %s49_s18  }
  0x91   : > { %p2686_p9 = por %p230_p7, %p62_p12  ;;  %s302_s9 = sand.u32 1, %s2432_s26  }
  0x92   : > { %s1831_s10 = sshll.u32 %s2440_s28, 7  ;;  %s2693_s15 = sshll.u32 %s302_s9, 3 }
  0x93   : > { %s2977_s23 = scalar_select %p2686_p9, 1, 0 }
  0x94   : > { %s2698_s14 = scalar_lea.hbm %s2946_s0, %s1831_s10  ;;  %s306_s13 = scalar_lea.vmem [#allocation2], %s2693_s15 }
  0x95   : > { %s316_s7 = sshll.u32 %s306_s13, 4  ;;  %p2703_p10 = pnand %p2014_p5, %p2664_p11  ;;  %s2707_s7 = int_to_ptr.vmem [resolvable:$true] %s316_s7 }
  0x96   : > { %s2712_s21 = scalar_lea.hbm %s2947_s1, %s1831_s10  ;;  %s303_s3 = scalar_lea.sflag [#allocation3], %s302_s9 }
  0x97   : > { %s2286_s4 = scalar_lea.hbm %s2698_s14, 128  ;;  %p2288_p1 = pneg %p2703_p10 }
  0x98   : > { %p2287_p8 = scmp.ne.s32.totalorder %s2698_s14, %s2286_s4  ;;  %s2291_s5 = scalar_lea.hbm %s2946_s0, 256 }
  0x99   : > { %p2292_p12 = scmp.lt.u32.totalorder %s2698_s14, %s2946_s0  ;;  %p2293_p6 = scmp.lt.u32.totalorder %s2291_s5, %s2286_s4 }
  0x9a   : > { %p2289_p3 = pnand %p2288_p1, %p2287_p8  ;;  %p2295_p0 = scmp.lt.u32.totalorder %s2286_s4, %s2698_s14 }
  0x9b   : > { %p2294_p13 = por %p2293_p6, %p2292_p12 }
  0x9c   : > { %p2290_p11 = pneg %p2289_p3 }
  0x9d   : > { %p2296_p7 = por %p2295_p0, %p2294_p13 }
  0x9f   : > { %p2297_p5 = pnand %p2296_p7, %p2290_p11 }
  0xa1   : > { %2300 = shalt.err (!%p2297_p5)
}
  0xa2   : > { %s2301_s9 = scalar_lea.vmem %s2707_s7, 128  ;;  %s2454_s10 = smov [#allocation2]  }
  0xa3   : > { %p2302_p8 = scmp.ne.s32.totalorder %s2707_s7, %s2301_s9  ;;  %s2306_s11 = sshll.u32 %s2454_s10, 4  ;;  %s2307_s11 = int_to_ptr.vmem [resolvable:$false] %s2306_s11 }
  0xa4   : > { %s2308_s6 = scalar_lea.vmem %s2307_s11, 256  ;;  %p2309_p4 = scmp.lt.s32.totalorder %s2707_s7, %s2307_s11 }
  0xa5   : > { %p2304_p3 = pnand %p2302_p8, %p2288_p1  ;;  %p2310_p12 = scmp.lt.s32.totalorder %s2308_s6, %s2301_s9 }
  0xa7   : > { %p2305_p9 = pneg %p2304_p3  ;;  %p2311_p6 = por %p2310_p12, %p2309_p4 }
  0xa9   : > { %p2312_p13 = pnand %p2311_p6, %p2305_p9 }
  0xab   : > { %2315 = shalt.err (!%p2312_p13)
}
  0xac   : > { %2002 = dma.hbm_to_vmem [thread:$0]  (!%p2703_p10), %s2698_s14, 128, %s2707_s7, %s303_s3  }
  0xad   : > { %s323_s4 = sand.u32 1, %s2444_s29   ;;  %s327_s5 = scalar_lea.vmem [#allocation5], %s2693_s15 }
  0xae   : > { %s335_s16 = sshll.u32 %s327_s5, 4  ;;  %s324_s12 = scalar_lea.sflag [#allocation6], %s323_s4  ;;  %s336_s16 = int_to_ptr.vmem [resolvable:$true] %s335_s16 }
  0xaf   : > { %s2316_s19 = scalar_lea.hbm %s2712_s21, 128  ;;  %s2321_s10 = scalar_lea.hbm %s2947_s1, 256 }
  0xb0   : > { %p2317_p4 = scmp.ne.s32.totalorder %s2712_s21, %s2316_s19  ;;  %p2322_p0 = scmp.lt.u32.totalorder %s2712_s21, %s2947_s1 }
  0xb1   : > { %p2323_p7 = scmp.lt.u32.totalorder %s2321_s10, %s2316_s19  ;;  %p2325_p8 = scmp.lt.u32.totalorder %s2316_s19, %s2712_s21 }
  0xb2   : > { %p2319_p9 = pnand %p2317_p4, %p2288_p1 }
  0xb3   : > { %p2324_p5 = por %p2323_p7, %p2322_p0 }
  0xb4   : > { %p2320_p11 = pneg %p2319_p9 }
  0xb5   : > { %p2326_p3 = por %p2325_p8, %p2324_p5 }
  0xb7   : > { %p2327_p12 = pnand %p2326_p3, %p2320_p11 }
  0xb9   : > { %2330 = shalt.err (!%p2327_p12)
}
  0xba   : > { %s2331_s3 = scalar_lea.vmem %s336_s16, 128  ;;  %s2455_s15 = smov [#allocation5]  }
  0xbb   : > { %p2332_p6 = scmp.ne.s32.totalorder %s336_s16, %s2331_s3  ;;  %s2336_s14 = sshll.u32 %s2455_s15, 4  ;;  %s2337_s14 = int_to_ptr.vmem [resolvable:$false] %s2336_s14 }
  0xbc   : > { %s2338_s7 = scalar_lea.vmem %s2337_s14, 256  ;;  %p2339_p9 = scmp.lt.s32.totalorder %s336_s16, %s2337_s14 }
  0xbd   : > { %p2334_p13 = pnand %p2332_p6, %p2288_p1  ;;  %p2340_p2 = scmp.lt.s32.totalorder %s2338_s7, %s2331_s3 }
  0xbf   : > { %p2335_p4 = pneg %p2334_p13  ;;  %p2341_p0 = por %p2340_p2, %p2339_p9 }
  0xc1   : > { %p2342_p7 = pnand %p2341_p0, %p2335_p4 }
  0xc3   : > { %2345 = shalt.err (!%p2342_p7)
}
  0xc4   : > { %2005 = dma.hbm_to_vmem [thread:$0]  (!%p2703_p10), %s2712_s21, 128, %s336_s16, %s324_s12  }
  0xc5   : > { %p2979_p11 = scmp.ne.s32.totalorder %s2965_s8, 0 }
  0xc6   : > { %s2763_s4 = sand.u32 (!%p2979_p11), 1, %s2428_s25   ;;  %p2980_p2 = scmp.ne.s32.totalorder (!%p2979_p11), %s2975_s17, 0 }
  0xc7   : > { %350 = sbr.rel (%p2979_p11) target bundleno = 3176 (0xc68), region = 48  ;;  %s1743_s5 = sshll.u32 (!%p2979_p11), %s2763_s4, 3 }
  0xc8   : > { %s353_s19 = scalar_lea.sflag (!%p2979_p11), [#allocation3], %s2763_s4  ;;  %s2767_s13 = scalar_lea.vmem (!%p2979_p11), [#allocation2], %s1743_s5 }
  0xce   : > { %2399 = dma.done.wait (%p2980_p2), %s353_s19, 128  }
  0xcf   : > { %2401 = vsyncadd (%p2980_p2), %s353_s19, 4294967168  ;;  %s361_s18 = sand.u32 1, %s2534_s30   ;;  %s2774_s21 = scalar_lea.vmem [#allocation5], %s1743_s5 }
  0xd0   : > { %s362_s8 = scalar_lea.sflag [#allocation6], %s361_s18 }
  0xd1   : > { %2403 = dma.done.wait (%p2980_p2), %s362_s8, 128  }
  0xd2   : > { %2405 = vsyncadd (%p2980_p2), %s362_s8, 4294967168  ;;  %p2981_p10 = scmp.eq.s32.totalorder %s2534_s30, 0 }
  0xd4   : > { %2407 = dma.done.wait (%p2981_p10), [#allocation6], 2048   ;;  %p2982_p1 = pmov %p2981_p10 }
  0xd6   : > { %2409 = vsyncadd (%p2982_p1), [#allocation6], 4294965248  ;;  %p2983_p5 = pmov %p2982_p1 }
  0xd7   : > { %p2984_p8 = pmov %p2982_p1 }
  0xd8   : > { %2411 = dma.done.wait (%p2983_p5), [#allocation9], 4096  }
  0xd9   : > { %2413 = vsyncadd (%p2984_p8), [#allocation9], 4294963200  ;;  %p2985_p3 = pmov %p2982_p1 }
  0xda   : > { %p2986_p12 = pmov %p2982_p1 }
  0xdb   : > { %2415 = dma.done.wait (%p2985_p3), [#allocation12], 2048  }
  0xdc   : > { %2417 = vsyncadd (%p2986_p12), [#allocation12], 4294965248  ;;  %v2082_v0 = vld [vmem:[#allocation8 + $0x40] sm:$0xff]   ;;  %v2085_v3 = vld [vmem:[#allocation8 + $0x48] sm:$0xff]   ;;  %v2456_v38 = vmov 0.0   ;;  %vm2457_vm0 = vmmov 0  }
  0xdd   : > { %v2083_v1 = vld [vmem:[#allocation8] sm:$0xff]   ;;  %1856 = vmatprep.subr.bf16.mxu1 %v2082_v0  ;;  %v2087_v5 = vld [vmem:[#allocation8 + $0x8] sm:$0xff]   ;;  %v2089_v7 = vld [vmem:[#allocation8 + $0x50] sm:$0xff]   ;;  %vm965_vm1 = vcmask 261120   ;;  %s2458_s30 = smov 96   ;;  %p420_p6 = scmp.lt.s32.totalorder %s2436_s27, 1 }
  0xde   : > { %v2084_v2 = vld [vmem:[#allocation7 + $0x40] sm:$0xff]   ;;  %1857 = vmatpush3.bf16.msra.mxu1 %v2083_v1  ;;  %v2088_v6 = vld [vmem:[#allocation7 + $0x48] sm:$0xff]   ;;  %v2091_v9 = vld [vmem:[#allocation8 + $0x10] sm:$0xff]   ;;  %vm1020_vm4 = vcmask 64512   ;;  %vm1036_vm5 = vcmask 1043456   ;;  %s2460_s10 = smov 64  }
  0xdf   : > { %1834 = vmatprep.subr.bf16.mxu0 %v2084_v2  ;;  %v2086_v4 = vld [vmem:[#allocation7] sm:$0xff]   ;;  %1858 = vmatprep.subr.bf16.mxu1 %v2085_v3  ;;  %v2090_v8 = vld [vmem:[#allocation7 + $0x8] sm:$0xff]   ;;  %v2092_v10 = vld [vmem:[#allocation7 + $0x50] sm:$0xff]   ;;  %s421_s17 = scalar_select %p420_p6, %s2436_s27, 1  ;;  %vm1429_vm6 = vcmask 523264   ;;  %vm1431_vm7 = vcmask 785408  }
  0xe0   : > { %1835 = vmatpush3.bf16.msra.mxu0 %v2086_v4  ;;  %v2093_v11 = vld [vmem:[#allocation8 + $0x58] sm:$0xff]   ;;  %v2094_v12 = vld [vmem:[#allocation7 + $0x10] sm:$0xff]   ;;  %v2097_v15 = vld [vmem:[#allocation8 + $0x60] sm:$0xff]   ;;  %s2461_s11 = smov 32   ;;  %s1749_s6 = sshll.u32 %s2763_s4, 4 }
  0xe1   : > { %1836 = vmatprep.subr.bf16.mxu0 %v2088_v6  ;;  %v2095_v13 = vld [vmem:[#allocation8 + $0x18] sm:$0xff]   ;;  %v2099_v17 = vld [vmem:[#allocation8 + $0x20] sm:$0xff]   ;;  %v2101_v19 = vld [vmem:[#allocation8 + $0x68] sm:$0xff]   ;;  %s422_s9 = scalar_lea.vmem %s2948_s2, %s421_s17  ;;  %v1014_v6 = vlaneseq  ;;  %s419_s3 = scalar_lea.vmem [#allocation13], %s1749_s6 }
  0xe2   : > { %1859 = vmatpush3.bf16.msra.mxu1 %v2087_v5  ;;  %v2096_v14 = vld [vmem:[#allocation7 + $0x58] sm:$0xff]   ;;  %v2100_v18 = vld [vmem:[#allocation7 + $0x60] sm:$0xff]   ;;  %v2103_v21 = vld [vmem:[#allocation8 + $0x28] sm:$0xff]   ;;  %v2459_v5 = vmov 0   ;;  %s1574_s15 = sshll.u32 %s419_s3, 4  ;;  %s1833_s14 = sshll.u32 %s2436_s27, 8  ;;  %s2894_s15 = int_to_ptr.vmem [resolvable:$true] %s1574_s15 }
  0xe3   : > { %1860 = vmatprep.subr.bf16.mxu1 %v2089_v7  ;;  %v2098_v16 = vld [vmem:[#allocation7 + $0x18] sm:$0xff]   ;;  %v2102_v20 = vld [vmem:[#allocation7 + $0x20] sm:$0xff]   ;;  %v2104_v22 = vld [vmem:[#allocation7 + $0x68] sm:$0xff]   ;;  %s2987_s19 = sld [smem:[#allocation25_spill]]  ;;  %s1558_s18 = scalar_lea.sflag [#allocation4], %s2763_s4 }
  0xe4   : > { %1837 = vmatpush3.bf16.msra.mxu0 %v2090_v8  ;;  %v2105_v23 = vld [vmem:[#allocation8 + $0x70] sm:$0xff]   ;;  %v2106_v24 = vld [vmem:[#allocation7 + $0x28] sm:$0xff]   ;;  %v2109_v27 = vld [vmem:[#allocation8 + $0x78] sm:$0xff]   ;;  %v1015_v8 = vshrl.u32 %v1014_v6, 7  ;;  %s2346_s8 = scalar_lea.vmem %s2894_s15, 256  ;;  %p2988_p4 = scmp.ne.s32.totalorder %s2976_s20, 0 }
  0xe5   : > { %1838 = vmatprep.subr.bf16.mxu0 %v2092_v10  ;;  %v2107_v25 = vld [vmem:[#allocation8 + $0x30] sm:$0xff]   ;;  %v2111_v29 = vld [vmem:[#allocation8 + $0x38] sm:$0xff]   ;;  %v424_v35 = vld [vmem:[%s2767_s13] sm:$0xff]  ;;  %p2347_p13 = scmp.ne.s32.totalorder %s2894_s15, %s2346_s8  ;;  %s2462_s27 = smov [#allocation13]  }
  0xe6   : > { %1861 = vmatpush3.bf16.msra.mxu1 %v2091_v9  ;;  %v2108_v26 = vld [vmem:[#allocation7 + $0x70] sm:$0xff]   ;;  %v2114_v33 = vld [vmem:[#allocation7 + $0x78] sm:$0xff]   ;;  %v1750_v36 = vcombine.low %v424_v35, %v424_v35  ;;  %v1751_v37 = vcombine.high %v424_v35, %v424_v35  ;;  %v2118_v53 = vld [vmem:[#allocation10 + $0x40] sm:$0xff]   ;;  %v1016_v9 = vsub.s32 0, %v1015_v8 }
  0xe7   : > { %1862 = vmatprep.subr.bf16.mxu1 %v2093_v11  ;;  %v2110_v28 = vld [vmem:[#allocation7 + $0x30] sm:$0xff]   ;;  %v2115_v34 = vld [vmem:[#allocation7 + $0x38] sm:$0xff]   ;;  %v2119_v54 = vld [vmem:[#allocation10] sm:$0xff]   ;;  %p2348_p9 = pnand %p2347_p13, %p2988_p4 }
  0xe8   : > { %1839 = vmatpush3.bf16.msra.mxu0 %v2094_v12  ;;  %v425_v30 = vld [vmem:[%s2774_s21] sm:$0xff]  ;;  %674 = vmatprep.mubr.bf16.mxu0 %v1751_v37  ;;  %v2120_v55 = vld [vmem:[#allocation10 + $0x48] sm:$0xff]   ;;  %v2126_v61 = vld [vmem:[#allocation10 + $0x60] sm:$0xff]   ;;  %s2350_s21 = sshll.u32 %s2462_s27, 4  ;;  %s2351_s21 = int_to_ptr.vmem [resolvable:$false] %s2350_s21 }
  0xe9   : > { %1840 = vmatprep.subr.bf16.mxu0 %v2096_v14  ;;  %v2793_v31 = vcombine.low %v425_v30, %v425_v30  ;;  %v1769_v32 = vcombine.high %v425_v30, %v425_v30  ;;  %v2121_v56 = vld [vmem:[#allocation10 + $0x8] sm:$0xff]   ;;  %v2122_v57 = vld [vmem:[#allocation10 + $0x50] sm:$0xff]   ;;  %v2124_v59 = vld [vmem:[#allocation10 + $0x58] sm:$0xff]   ;;  %s2899_s13 = scalar_lea.hbm %s2987_s19, %s1833_s14  ;;  %p2349_p0 = pneg %p2348_p9 }
  0xea   : > { %1863 = vmatpush3.bf16.msra.mxu1 %v2095_v13  ;;  %v2123_v58 = vld [vmem:[#allocation10 + $0x10] sm:$0xff]   ;;  %v2125_v60 = vld [vmem:[#allocation10 + $0x18] sm:$0xff]   ;;  %v2127_v62 = vld [vmem:[#allocation10 + $0x20] sm:$0xff]   ;;  %p2353_p7 = scmp.lt.s32.totalorder %s2894_s15, %s2351_s21 }
  0xeb   : > { %1864 = vmatprep.subr.bf16.mxu1 %v2097_v15  ;;  %818 = vmatprep.mubr.bf16.mxu1 %v1769_v32  ;;  %v2128_v63 = vld [vmem:[#allocation10 + $0x68] sm:$0xff]   ;;  %v2130_v1 = vld [vmem:[#allocation10 + $0x70] sm:$0xff]   ;;  %v2132_v3 = vld [vmem:[#allocation10 + $0x78] sm:$0xff]  }
  0xec   : > { %1841 = vmatpush3.bf16.msra.mxu0 %v2098_v16  ;;  %v2129_v0 = vld [vmem:[#allocation10 + $0x28] sm:$0xff]   ;;  %v2131_v2 = vld [vmem:[#allocation10 + $0x30] sm:$0xff]   ;;  %v2133_v4 = vld [vmem:[#allocation10 + $0x38] sm:$0xff]  }
  0xed   : > { %1842 = vmatprep.subr.bf16.mxu0 %v2100_v18  ;;  %v426_v7 = vld [vmem:[%s422_s9] sm:$0x1] }
  0xee   : > { %1865 = vmatpush3.bf16.msra.mxu1 %v2099_v17  ;;  %vm1012_vm2 = vcmp.eq.f32.partialorder %v426_v7, 0.0 }
  0xef   : > { %1866 = vmatprep.subr.bf16.mxu1 %v2101_v19  ;;  %v1013_v10 = vsel %vm1012_vm2, 1, %v2459_v5 }
  0xf0   : > { %1843 = vmatpush3.bf16.msra.mxu0 %v2102_v20  ;;  %v2821_v11 = vrot.slane %v1013_v10, %v1016_v9 }
  0xf1   : > { %1844 = vmatprep.subr.bf16.mxu0 %v2104_v22 }
  0xf2   : > { %1867 = vmatpush3.bf16.msra.mxu1 %v2103_v21  ;;  %vm1018_vm3 = vcmp.eq.s32.totalorder %v2821_v11, 1 }
  0xf3   : > { %1868 = vmatprep.subr.bf16.mxu1 %v2105_v23 }
  0xf4   : > { %1845 = vmatpush3.bf16.msra.mxu0 %v2106_v24 }
  0xf5   : > { %1846 = vmatprep.subr.bf16.mxu0 %v2108_v26 }
  0xf6   : > { %1869 = vmatpush3.bf16.msra.mxu1 %v2107_v25 }
  0xf7   : > { %1870 = vmatprep.subr.bf16.mxu1 %v2109_v27 }
  0xf8   : > { %1847 = vmatpush3.bf16.msra.mxu0 %v2110_v28 }
  0xf9   : > { %1848 = vmatprep.subr.bf16.mxu0 %v2114_v33 }
  0xfa   : > { %1871 = vmatpush3.bf16.msra.mxu1 %v2111_v29 }
  0xfb   : > { %1916 = vmatprep.subr.bf16.mxu1 %v2456_v38 }
  0xfc   : > { %1849 = vmatpush3.bf16.msra.mxu0 %v2115_v34 }
  0xfd   : > { %819 = vmatmul.mubr.bf16.vlgmr.msra.gmra.mrb[0].mxu1 %v2793_v31  ;;  %1878 = vmatprep.subr.bf16.mxu0 %v2118_v53 }
  0xfe   : > { %1918 = vmatprep.mubr.msk.bf16.mxu1 %vm2457_vm0, %v2456_v38 }
  0xff   : > { %675 = vmatmul.mubr.bf16.vlgmr.msra.gmra.mrb[0].mxu0 %v1750_v36 }
 0x100   : > { %954 = vmatprep.mubr.bf16.mxu0 %v1769_v32  ;;  %1879 = vmatpush3.bf16.msra.mxu0 %v2119_v54 }
 0x101   : > { %1880 = vmatprep.subr.bf16.mxu0 %v2120_v55 }
 0x104   : > { %1881 = vmatpush3.bf16.msra.mxu0 %v2121_v56 }
 0x105   : > { %1882 = vmatprep.subr.bf16.mxu0 %v2122_v57 }
 0x108   : > { %1883 = vmatpush3.bf16.msra.mxu0 %v2123_v58 }
 0x109   : > { %1884 = vmatprep.subr.bf16.mxu0 %v2124_v59 }
 0x10c   : > { %1885 = vmatpush3.bf16.msra.mxu0 %v2125_v60 }
 0x10d   : > { %1886 = vmatprep.subr.bf16.mxu0 %v2126_v61 }
 0x110   : > { %1887 = vmatpush3.bf16.msra.mxu0 %v2127_v62 }
 0x111   : > { %1888 = vmatprep.subr.bf16.mxu0 %v2128_v63 }
 0x114   : > { %1889 = vmatpush3.bf16.msra.mxu0 %v2129_v0 }
 0x115   : > { %1890 = vmatprep.subr.bf16.mxu0 %v2130_v1 }
 0x118   : > { %1891 = vmatpush3.bf16.msra.mxu0 %v2131_v2 }
 0x119   : > { %1892 = vmatprep.subr.bf16.mxu0 %v2132_v3 }
 0x11c   : > { %1893 = vmatpush3.bf16.msra.mxu0 %v2133_v4 }
 0x11f   : > { %955 = vmatmul.mubr.bf16.vlgmr.msra.gmra.mrb[4].mxu0 %v2793_v31 }
 0x120   : > { %1546 = vmatprep.mubr.bf16.mxu0 %v2459_v5 }
 0x1d0   : > { %v1872_v39 = vpop.f32.mrb[0].mxu1 }
 0x1d1   : > { %v1873_v40 = vpop.f32.mrb[1].mxu1 }
 0x1d2   : > { %v1874_v41 = vadd.f32 %v1873_v40, %v1872_v39  ;;  %v1875_v42 = vpop.f32.mrb[2].mxu1  ;;  %v1850_v44 = vpop.f32.mrb[0].mxu0 }
 0x1d3   : > { %v1876_v43 = vpop.f32.mrb[3].mxu1  ;;  %v1851_v46 = vpop.f32.mrb[1].mxu0 }
 0x1d4   : > { %v2800_v45 = vpack.c.bf16 %v1874_v41, %v1874_v41  ;;  %v1852_v47 = vadd.f32 %v1851_v46, %v1850_v44  ;;  %v1853_v48 = vpop.f32.mrb[2].mxu0 }
 0x1d5   : > { %v1854_v49 = vpop.f32.mrb[3].mxu0 }
 0x1d6   : > { %1084 = vrot.lane.b32.xlu1 %v2800_v45, %s2458_s30  ;;  %v970_v50 = vsel %vm965_vm1, %v2800_v45, 0  ;;  %v682_v51 = vmul.f32 0.17677669, %v1852_v47 }
 0x1d7   : > { %1917 = vmatpush3.bf16.xpose.msra.mxu1 %v970_v50 }
 0x1d8   : > { %1922 = vmatprep.subr.bf16.mxu1 %v2456_v38  ;;  %v2807_v52 = vpack.c.bf16 %v682_v51, %v682_v51 }
 0x1da   : > { %1081 = vrot.lane.b32.xlu1 %v2807_v52, %s2458_s30 }
 0x1de   : > { %1919 = vmatmul.mubr.msk.bf16.vlgmr.msra.gmra.mrb[4].mxu1 %vm965_vm1, %v2807_v52 }
 0x1df   : > { %1924 = vmatprep.mubr.msk.bf16.mxu1 %vm2457_vm0, %v2456_v38 }
 0x1f2   : > { %v1894_v18 = vpop.f32.mrb[4].mxu0 }
 0x1f3   : > { %v1895_v19 = vpop.f32.mrb[5].mxu0 }
 0x1f4   : > { %v1896_v20 = vadd.f32 %v1895_v19, %v1894_v18  ;;  %v1897_v21 = vpop.f32.mrb[6].mxu0 }
 0x1f5   : > { %v1898_v22 = vpop.f32.mrb[7].mxu0 }
 0x1f6   : > { %v2828_v28 = vpack.c.bf16 %v1896_v20, %v1896_v20 }
 0x1f8   : > { %v1038_v29 = vsel %vm1036_vm5, %v2828_v28, 0 }
 0x1f9   : > { %1923 = vmatpush3.bf16.msra.mxu1 %v1038_v29 }
 0x1fa   : > { %1928 = vmatprep.subr.bf16.mxu1 %v2456_v38 }
 0x248   : > { %v1085_v33 = vpop.permute.xlu1 %1084 }
 0x249   : > { %v1090_v35 = vsel %vm965_vm1, %v1085_v33, 0 }
 0x24c   : > { %v1082_v36 = vpop.permute.xlu1 %1081 }
 0x2b1   : > { %v1006_v12 = vpop.f32.mrb[4].mxu1 }
 0x2b2   : > { %v1019_v13 = vsel %vm1018_vm3, -1e+09, %v1006_v12  ;;  %v1920_v14 = vpop.f32.mrb[5].mxu1 }
 0x2b3   : > { %v1009_v15 = vpop.f32.mrb[6].mxu1  ;;  %v1021_v16 = vsel %vm1020_vm4, %v1019_v13, -inf }
 0x2b4   : > { %1022 = vmax.xlane.f32.xlu0 %v1021_v16  ;;  %v1921_v17 = vpop.f32.mrb[7].mxu1 }
 0x341   : > { %v1023_v23 = vpop.xlane.xlu0 %1022 }
 0x342   : > { %v1024_v24 = vsub.f32 %v1019_v13, %v1023_v23 }
 0x344   : > { %v1025_v25 = vmul.f32 1.442695, %v1024_v24 }
 0x346   : > { %2158 = vpow2.f32 %v1025_v25 }
 0x350   : > { %v2159_v26 = vpop.eup %2158 }
 0x351   : > { %v1027_v27 = vsel %vm1020_vm4, %v2159_v26, 0.0 }
 0x352   : > { %1028 = vadd.xlane.f32.xlu0 %v1027_v27 }
 0x3df   : > { %v1029_v30 = vpop.xlane.xlu0 %1028 }
 0x3e0   : > { %2160 = vrcp.f32 %v1029_v30 }
 0x3ea   : > { %v2161_v31 = vpop.eup %2160 }
 0x3eb   : > { %v1031_v32 = vmul.f32 %v2161_v31, %v2159_v26 }
 0x3ed   : > { %v1032_v34 = vpack.c.bf16 %v1031_v32, %v1031_v32 }
 0x3ef   : > { %1925 = vmatmul.mubr.msk.bf16.vlgmr.msra.gmra.mrb[8].mxu1 %vm1020_vm4, %v1032_v34 }
 0x3f0   : > { %1929 = vmatpush3.bf16.xpose.msra.mxu1 %v1090_v35  ;;  %1930 = vmatprep.mubr.msk.bf16.mxu1 %vm2457_vm0, %v2456_v38 }
 0x3f1   : > { %1934 = vmatprep.subr.bf16.mxu1 %v2456_v38 }
 0x3f7   : > { %1931 = vmatmul.mubr.msk.bf16.vlgmr.msra.gmra.mrb[12].mxu1 %vm965_vm1, %v1082_v36 }
 0x3f8   : > { %1936 = vmatprep.mubr.msk.bf16.mxu1 %vm2457_vm0, %v2456_v38 }
 0x4c2   : > { %v2841_v37 = vpop.f32.mrb[8].mxu1 }
 0x4c3   : > { %v1926_v39 = vpop.f32.mrb[9].mxu1 }
 0x4c4   : > { %v1077_v40 = vpop.f32.mrb[10].mxu1 }
 0x4c5   : > { %v1927_v41 = vpop.f32.mrb[11].mxu1 }
 0x4ca   : > { %v1126_v42 = vpop.f32.mrb[12].mxu1 }
 0x4cb   : > { %v1132_v43 = vsel %vm1018_vm3, -1e+09, %v1126_v42  ;;  %v1932_v44 = vpop.f32.mrb[13].mxu1 }
 0x4cc   : > { %v1129_v46 = vpop.f32.mrb[14].mxu1  ;;  %v1133_v47 = vsel %vm1020_vm4, %v1132_v43, -inf  ;;  %v2134_v44 = vld [vmem:[#allocation11] ss:$8 sps:$4 sm:$0xff]  }
 0x4cd   : > { %1134 = vmax.xlane.f32.xlu0 %v1133_v47  ;;  %v1933_v48 = vpop.f32.mrb[15].mxu1  ;;  %v2136_v46 = vld [vmem:[#allocation11 + $0x4] ss:$8 sps:$4 sm:$0xff]   ;;  %v2139_v47 = vld [vmem:[#allocation11 + $0x14] ss:$8 sps:$4 sm:$0xff]  }
 0x4ce   : > { %1514 = vmatprep.subr.bf16.mxu0 %v2136_v46  ;;  %v2137_v48 = vld [vmem:[#allocation11 + $0x10] ss:$8 sps:$4 sm:$0xff]  }
 0x4cf   : > { %1515 = vmatpush1.bf16.msra.mxu0 %v2134_v44 }
 0x4d0   : > { %1516 = vmatprep.subr.bf16.mxu0 %v2139_v47 }
 0x4d3   : > { %1517 = vmatpush1.bf16.msra.mxu0 %v2137_v48 }
 0x4e3   : > { %1146 = vrot.lane.b32.xlu0 %v2828_v28, %s2458_s30 }
 0x4e7   : > { %1196 = vrot.lane.b32.xlu0 %v2800_v45, %s2460_s10 }
 0x4eb   : > { %1194 = vrot.lane.b32.xlu0 %v2807_v52, %s2460_s10 }
 0x55a   : > { %v1135_v49 = vpop.xlane.xlu0 %1134 }
 0x55b   : > { %v1136_v50 = vsub.f32 %v1132_v43, %v1135_v49  ;;  %v2142_v49 = vld [vmem:[#allocation11 + $0x24] ss:$8 sps:$4 sm:$0xff]  }
 0x55c   : > { %1518 = vmatprep.subr.bf16.mxu0 %v2142_v49 }
 0x55d   : > { %v1137_v51 = vmul.f32 1.442695, %v1136_v50  ;;  %v2140_v50 = vld [vmem:[#allocation11 + $0x20] ss:$8 sps:$4 sm:$0xff]  }
 0x55e   : > { %v1147_v53 = vpop.permute.xlu0 %1146  ;;  %1519 = vmatpush1.bf16.msra.mxu0 %v2140_v50 }
 0x55f   : > { %2162 = vpow2.f32 %v1137_v51  ;;  %v1152_v54 = vsel %vm1036_vm5, %v1147_v53, 0  ;;  %v2145_v51 = vld [vmem:[#allocation11 + $0x34] ss:$8 sps:$4 sm:$0xff]   ;;  %v2143_v53 = vld [vmem:[#allocation11 + $0x30] ss:$8 sps:$4 sm:$0xff]  }
 0x560   : > { %1935 = vmatpush3.bf16.msra.mxu1 %v1152_v54  ;;  %1520 = vmatprep.subr.bf16.mxu0 %v2145_v51  ;;  %v2148_v54 = vld [vmem:[#allocation11 + $0x44] ss:$8 sps:$4 sm:$0xff]  }
 0x561   : > { %1940 = vmatprep.subr.bf16.mxu1 %v2456_v38 }
 0x562   : > { %v1197_v60 = vpop.permute.xlu0 %1196  ;;  %1521 = vmatpush1.bf16.msra.mxu0 %v2143_v53 }
 0x563   : > { %v1202_v62 = vsel %vm965_vm1, %v1197_v60, 0  ;;  %1522 = vmatprep.subr.bf16.mxu0 %v2148_v54  ;;  %v2157_v60 = vld [vmem:[#allocation11 + $0x74] ss:$8 sps:$4 sm:$0xff]  }
 0x566   : > { %v1195_v0 = vpop.permute.xlu0 %1194 }
 0x569   : > { %v2163_v55 = vpop.eup %2162 }
 0x56a   : > { %v1139_v56 = vsel %vm1020_vm4, %v2163_v55, 0.0 }
 0x56b   : > { %1140 = vadd.xlane.f32.xlu1 %v1139_v56  ;;  %v2151_v56 = vld [vmem:[#allocation11 + $0x54] ss:$8 sps:$4 sm:$0xff]  }
 0x57c   : > { %1257 = vrot.lane.b32.xlu1 %v2828_v28, %s2460_s10 }
 0x5f8   : > { %v1141_v57 = vpop.xlane.xlu1 %1140 }
 0x5f9   : > { %2164 = vrcp.f32 %v1141_v57  ;;  %v2149_v57 = vld [vmem:[#allocation11 + $0x50] ss:$8 sps:$4 sm:$0xff]  }
 0x5fc   : > { %v1258_v63 = vpop.permute.xlu1 %1257 }
 0x5fd   : > { %v1263_v1 = vsel %vm1036_vm5, %v1258_v63, 0 }
 0x603   : > { %v2165_v58 = vpop.eup %2164 }
 0x604   : > { %v1143_v59 = vmul.f32 %v2165_v58, %v2163_v55  ;;  %v2146_v55 = vld [vmem:[#allocation11 + $0x40] ss:$8 sps:$4 sm:$0xff]   ;;  %v2154_v58 = vld [vmem:[#allocation11 + $0x64] ss:$8 sps:$4 sm:$0xff]  }
 0x605   : > { %1523 = vmatpush1.bf16.msra.mxu0 %v2146_v55 }
 0x606   : > { %v1144_v61 = vpack.c.bf16 %v1143_v59, %v1143_v59  ;;  %1524 = vmatprep.subr.bf16.mxu0 %v2151_v56  ;;  %v2152_v59 = vld [vmem:[#allocation11 + $0x60] ss:$8 sps:$4 sm:$0xff]  }
 0x608   : > { %1937 = vmatmul.mubr.msk.bf16.vlgmr.msra.gmra.mrb[16].mxu1 %vm1020_vm4, %v1144_v61  ;;  %v2155_v61 = vld [vmem:[#allocation11 + $0x70] ss:$8 sps:$4 sm:$0xff]  }
 0x609   : > { %1941 = vmatpush3.bf16.xpose.msra.mxu1 %v1202_v62  ;;  %1942 = vmatprep.mubr.msk.bf16.mxu1 %vm2457_vm0, %v2456_v38 }
 0x60a   : > { %1946 = vmatprep.subr.bf16.mxu1 %v2456_v38  ;;  %1525 = vmatpush1.bf16.msra.mxu0 %v2149_v57 }
 0x60b   : > { %1526 = vmatprep.subr.bf16.mxu0 %v2154_v58 }
 0x60e   : > { %1527 = vmatpush1.bf16.msra.mxu0 %v2152_v59 }
 0x60f   : > { %1528 = vmatprep.subr.bf16.mxu0 %v2157_v60 }
 0x610   : > { %1943 = vmatmul.mubr.msk.bf16.vlgmr.msra.gmra.mrb[20].mxu1 %vm965_vm1, %v1195_v0 }
 0x611   : > { %1947 = vmatpush3.bf16.msra.mxu1 %v1263_v1  ;;  %1948 = vmatprep.mubr.msk.bf16.mxu1 %vm2457_vm0, %v2456_v38 }
 0x612   : > { %1952 = vmatprep.subr.bf16.mxu1 %v2456_v38  ;;  %1529 = vmatpush1.bf16.msra.mxu0 %v2155_v61 }
 0x6db   : > { %v1188_v2 = vpop.f32.mrb[16].mxu1 }
 0x6dc   : > { %v1938_v3 = vpop.f32.mrb[17].mxu1 }
 0x6dd   : > { %v1191_v4 = vpop.f32.mrb[18].mxu1 }
 0x6de   : > { %v1939_v5 = vpop.f32.mrb[19].mxu1 }
 0x6e3   : > { %v1238_v6 = vpop.f32.mrb[20].mxu1 }
 0x6e4   : > { %v1244_v7 = vsel %vm1018_vm3, -1e+09, %v1238_v6  ;;  %v1944_v8 = vpop.f32.mrb[21].mxu1 }
 0x6e5   : > { %v1241_v9 = vpop.f32.mrb[22].mxu1  ;;  %v1245_v10 = vsel %vm1020_vm4, %v1244_v7, -inf }
 0x6e6   : > { %1246 = vmax.xlane.f32.xlu0 %v1245_v10  ;;  %v1945_v12 = vpop.f32.mrb[23].mxu1 }
 0x773   : > { %v1247_v13 = vpop.xlane.xlu0 %1246 }
 0x774   : > { %v1248_v14 = vsub.f32 %v1244_v7, %v1247_v13 }
 0x776   : > { %v1249_v15 = vmul.f32 1.442695, %v1248_v14 }
 0x778   : > { %2166 = vpow2.f32 %v1249_v15 }
 0x782   : > { %v2167_v16 = vpop.eup %2166 }
 0x783   : > { %v1251_v17 = vsel %vm1020_vm4, %v2167_v16, 0.0 }
 0x784   : > { %1252 = vadd.xlane.f32.xlu1 %v1251_v17 }
 0x795   : > { %1307 = vrot.lane.b32.xlu1 %v2800_v45, %s2461_s11 }
 0x799   : > { %1305 = vrot.lane.b32.xlu1 %v2807_v52, %s2461_s11 }
 0x811   : > { %v1253_v18 = vpop.xlane.xlu1 %1252 }
 0x812   : > { %2168 = vrcp.f32 %v1253_v18 }
 0x815   : > { %v1308_v21 = vpop.permute.xlu1 %1307 }
 0x816   : > { %v1313_v23 = vsel %vm965_vm1, %v1308_v21, 0 }
 0x819   : > { %v1306_v24 = vpop.permute.xlu1 %1305 }
 0x81c   : > { %v2169_v19 = vpop.eup %2168 }
 0x81d   : > { %v1255_v20 = vmul.f32 %v2169_v19, %v2167_v16 }
 0x81f   : > { %v1256_v22 = vpack.c.bf16 %v1255_v20, %v1255_v20 }
 0x821   : > { %1949 = vmatmul.mubr.msk.bf16.vlgmr.msra.gmra.mrb[24].mxu1 %vm1020_vm4, %v1256_v22 }
 0x822   : > { %1953 = vmatpush3.bf16.xpose.msra.mxu1 %v1313_v23  ;;  %1954 = vmatprep.mubr.msk.bf16.mxu1 %vm2457_vm0, %v2456_v38 }
 0x823   : > { %1958 = vmatprep.subr.bf16.mxu1 %v2456_v38 }
 0x829   : > { %1955 = vmatmul.mubr.msk.bf16.vlgmr.msra.gmra.mrb[28].mxu1 %vm965_vm1, %v1306_v24 }
 0x82a   : > { %1960 = vmatprep.mubr.msk.bf16.mxu1 %vm2457_vm0, %v2456_v38 }
 0x8f4   : > { %v1299_v45 = vpop.f32.mrb[24].mxu1 }
 0x8f5   : > { %v1950_v52 = vpop.f32.mrb[25].mxu1 }
 0x8f6   : > { %v1302_v25 = vpop.f32.mrb[26].mxu1 }
 0x8f7   : > { %v1951_v26 = vpop.f32.mrb[27].mxu1 }
 0x8fc   : > { %v1349_v27 = vpop.f32.mrb[28].mxu1 }
 0x8fd   : > { %v1355_v29 = vsel %vm1018_vm3, -1e+09, %v1349_v27  ;;  %v1956_v30 = vpop.f32.mrb[29].mxu1 }
 0x8fe   : > { %v1352_v31 = vpop.f32.mrb[30].mxu1  ;;  %v1356_v32 = vsel %vm1020_vm4, %v1355_v29, -inf }
 0x8ff   : > { %1357 = vmax.xlane.f32.xlu0 %v1356_v32  ;;  %v1957_v33 = vpop.f32.mrb[31].mxu1 }
 0x915   : > { %1368 = vrot.lane.b32.xlu0 %v2828_v28, %s2461_s11 }
 0x919   : > { %1417 = vrot.lane.b32.xlu0 %v1188_v2, %s2461_s11 }
 0x91d   : > { %1421 = vrot.lane.b32.xlu0 %v1299_v45, %s2460_s10 }
 0x98c   : > { %v1358_v38 = vpop.xlane.xlu0 %1357 }
 0x98d   : > { %v1359_v34 = vsub.f32 %v1355_v29, %v1358_v38 }
 0x98f   : > { %v1360_v35 = vmul.f32 1.442695, %v1359_v34 }
 0x990   : > { %v1369_v36 = vpop.permute.xlu0 %1368 }
 0x991   : > { %2170 = vpow2.f32 %v1360_v35  ;;  %v1374_v39 = vsel %vm1036_vm5, %v1369_v36, 0 }
 0x992   : > { %1959 = vmatpush3.bf16.msra.mxu1 %v1374_v39 }
 0x994   : > { %v1418_v2 = vpop.permute.xlu0 %1417 }
 0x995   : > { %v1428_v4 = vsel %vm965_vm1, %v2841_v37, %v1418_v2 }
 0x998   : > { %v1422_v3 = vpop.permute.xlu0 %1421 }
 0x999   : > { %v1430_v5 = vsel %vm1429_vm6, %v1428_v4, %v1422_v3 }
 0x99b   : > { %v2171_v11 = vpop.eup %2170 }
 0x99c   : > { %v1362_v40 = vsel %vm1020_vm4, %v2171_v11, 0.0 }
 0x99d   : > { %1363 = vadd.xlane.f32.xlu1 %v1362_v40 }
 0xa2a   : > { %v1364_v41 = vpop.xlane.xlu1 %1363 }
 0xa2b   : > { %2172 = vrcp.f32 %v1364_v41 }
 0xa35   : > { %v2173_v42 = vpop.eup %2172 }
 0xa36   : > { %v1366_v43 = vmul.f32 %v2173_v42, %v2171_v11 }
 0xa38   : > { %v1367_v28 = vpack.c.bf16 %v1366_v43, %v1366_v43 }
 0xa3a   : > { %1961 = vmatmul.mubr.msk.bf16.vlgmr.msra.gmra.mrb[32].mxu1 %vm1020_vm4, %v1367_v28 }
 0xb0d   : > { %v1410_v62 = vpop.f32.mrb[32].mxu1 }
 0xb0e   : > { %1425 = vrot.lane.b32.xlu0 %v1410_v62, %s2458_s30  ;;  %v1962_v63 = vpop.f32.mrb[33].mxu1  ;;  %s2352_s30 = scalar_lea.vmem %s2351_s21, 512 }
 0xb0f   : > { %v1413_v0 = vpop.f32.mrb[34].mxu1  ;;  %p2354_p11 = scmp.lt.s32.totalorder %s2352_s30, %s2346_s8 }
 0xb10   : > { %v1963_v1 = vpop.f32.mrb[35].mxu1 }
 0xb11   : > { %p2355_p2 = por %p2354_p11, %p2353_p7 }
 0xb13   : > { %p2356_p10 = pnand %p2355_p2, %p2349_p0 }
 0xb80   : > { %v1426_v6 = vpop.permute.xlu0 %1425 }
 0xb81   : > { %v1432_v7 = vsel %vm1431_vm7, %v1430_v5, %v1426_v6 }
 0xb82   : > { %v1433_v8 = vpack.c.bf16 %v1432_v7, %v1432_v7 }
 0xb84   : > { %1547 = vmatmul.mubr.bf16.vlgmr.msra.gmra.mrb[8].mxu0 %v1433_v8 }
 0xc57   : > { %v1548_v9 = vpop.f32.mrb[8].mxu0 }
 0xc58   : > { %1555 = vst [vmem:[%s419_s3] sm:$0xff] %v1548_v9  ;;  %v1550_v37 = vpop.f32.mrb[9].mxu0 }
 0xc59   : > { %1556 = vst [vmem:[%s419_s3 + $0x8] sm:$0xff] %v1550_v37  ;;  %v1552_v10 = vpop.f32.mrb[10].mxu0 }
 0xc5a   : > { %v1553_v12 = vpop.f32.mrb[11].mxu0 }
 0xc5b   : > { %2359 = shalt.err (!%p2356_p10)
}
 0xc5c   : > { %s2360_s4 = scalar_lea.hbm %s2899_s13, 256  ;;  %s2364_s12 = scalar_lea.hbm %s2987_s19, 512 }
 0xc5d   : > { %p2361_p1 = scmp.ne.s32.totalorder %s2899_s13, %s2360_s4  ;;  %p2365_p3 = scmp.lt.u32.totalorder %s2899_s13, %s2987_s19 }
 0xc5e   : > { %p2366_p12 = scmp.lt.u32.totalorder %s2364_s12, %s2360_s4  ;;  %p2368_p13 = scmp.lt.u32.totalorder %s2360_s4, %s2899_s13 }
 0xc5f   : > { %p2362_p5 = pnand %p2361_p1, %p2988_p4 }
 0xc60   : > { %p2367_p6 = por %p2366_p12, %p2365_p3 }
 0xc61   : > { %p2363_p8 = pneg %p2362_p5 }
 0xc62   : > { %p2369_p9 = por %p2368_p13, %p2367_p6 }
 0xc64   : > { %p2370_p0 = pnand %p2369_p9, %p2363_p8 }
 0xc66   : > { %2373 = shalt.err (!%p2370_p0)
}
 0xc67   : > { %1984 = dma.vmem_to_hbm [thread:$0]  (%p2988_p4), %s2894_s15, 256, %s2899_s13, %s1558_s18  }
 0xc68 PF: > { %s1586_s11 = sand.u32 1, %s2424_s24   ;;  %p2989_p7 = scmp.ne.s32.totalorder %s2977_s23, 0 }
 0xc69   : > { %p2990_p11 = scmp.ge.s32.totalorder %s2444_s29, 2  ;;  %s1587_s6 = scalar_lea.sflag [#allocation4], %s1586_s11 }
 0xc6b   : > { %p2007_p2 = pnand %p2990_p11, %p2989_p7 }
 0xc6d   : > { %2419 = dma.done.wait (!%p2007_p2), %s1587_s6, 256  }
 0xc6e   : > { %2421 = vsyncadd (!%p2007_p2), %s1587_s6, 4294967040  ;;  %s28_s29 = sadd.s32 1, %s2444_s29   ;;  %s2991_s20 = sld [smem:[#allocation20_spill]] }
 0xc6f   : > { %p25_p10 = scmp.ge.s32.totalorder %s28_s29, 4   ;;  %s2992_s24 = smov %s2428_s25 }
 0xc70   : > { %s2993_s25 = smov %s2432_s26  ;;  %s2994_s26 = smov %s2684_s22 }
 0xc71   : > { %s2995_s27 = smov %s2440_s28  ;;  %27 = sbr.rel (!%p25_p10) target bundleno = 16 (0x10), region = 125 }
 0xc74   : > { %s2996_s28 = smov %s2991_s20 }
 0xc78   :  { %1592 = vsyncpa [#allocation3], 1 }
 0xc79   :  { %1594 = vsyncpa [#allocation3 + $0x1], 1 }
 0xc7a   :  { %1595 = vsyncpa [#allocation6], 1 }
 0xc7b   :  { %1597 = vsyncpa [#allocation6 + $0x1], 1 }
 0xc7c   :  { %1598 = vsyncpa [#allocation9], 1 }
 0xc7d   :  { %1599 = vsyncpa [#allocation12], 1 }
 0xc7e   :  { %1600 = vsyncpa [#allocation4], 1 }
 0xc7f   :  { %1602 = vsyncpa [#allocation4 + $0x1], 1 }

</bundles_post_ra>
